<compile_context>
chip_gen: v7x
topology: tpu7x:2x2x1
jax: 0.10.0
libtpu: 0.0.40
codegen_flags: <defaults>
</compile_context>

<pallas_src>
import functools

import jax
import jax.numpy as jnp
from jax.experimental import pallas as pl
from jax.experimental.pallas import tpu as pltpu

K_IN = 28 * 28        # 784 — Linear1 contraction dim (full-dim block, no HBM padding)
HIDDEN = 128
N_OUT = 10
OUT_PAD = 128         # lane-dense output width; sliced back to 10 in the wrapper
MAX_TILE = 2048       # VMEM safety cap on the batch tile (v7x: 64 MiB physical)


def _round_up(x, m):
    return (x + m - 1) // m * m


def _mlp_kernel(x_ref, w1_ref, b1_ref, w2_ref, b2_ref, o_ref):
    # Linear1 on the MXU: (tile, 784) @ (784, 128); f32 accumulation regardless
    # of the streaming dtype (f32 or bf16) of x / W1.
    h = jnp.dot(x_ref[...], w1_ref[...], preferred_element_type=jnp.float32)
    # Bias + ReLU on the VPU, in f32 (v5e has no bf16 VALU).
    h = jnp.maximum(h + b1_ref[...], 0.0)
    # Linear2: (tile, 128) @ (128, 128-padded) -> lane-dense output block.
    # (Padded output columns are intentional non-optimization: MXU is idle-rich
    #  here; the lane-dense store is the bigger lever.)
    out = jnp.dot(h, w2_ref[...], preferred_element_type=jnp.float32)
    o_ref[...] = (out + b2_ref[...]).astype(o_ref.dtype)


def simple_nn_forward(x_nchw, w1, b1, w2, b2, *, tile_n=1024):
    """Forward pass of SimpleNN.

    Args:
      x_nchw: (N, 1, 28, 28) images, float32 or bfloat16 (bf16 halves the
        dominant HBM stream; produce it upstream, no extra pass is added here).
      w1: (128, 784) float32 — PyTorch Linear weight layout (out, in).
      b1: (128,)     float32.
      w2: (10, 128)  float32.
      b2: (10,)      float32.
      tile_n: max rows of the batch processed per grid step.

    Returns:
      logits: (N, 10) float32.
    """
    n = x_nchw.shape[0]
    x = x_nchw.reshape(n, K_IN)                       # nn.Flatten(); layout no-op

    in_dtype = x.dtype
    use_bf16 = in_dtype == jnp.bfloat16
    out_dtype = jnp.bfloat16 if use_bf16 else jnp.float32
    in_itemsize = jnp.dtype(in_dtype).itemsize
    out_itemsize = jnp.dtype(out_dtype).itemsize
    sub = 16 if use_bf16 else 8                        # sublane alignment

    # Batch tile: at least 2 grid steps when the batch allows (v7x megacore can
    # shard the "parallel" axis across its 2 TensorCores), capped for VMEM.
    if n > sub:
        half = _round_up(pl.cdiv(n, 2), sub)
    else:
        half = _round_up(max(n, 1), sub)
    tile = max(sub, min(int(tile_n), half, MAX_TILE))
    tile = _round_up(tile, sub)
    grid = (pl.cdiv(n, tile),)    # partial last block handled by Pallas masking

    # One-time, tiny weight/bias prep (not on the hot path).
    w1_t = w1.T.astype(in_dtype)                                         # (784, 128)
    b1_2d = b1.reshape(1, HIDDEN).astype(jnp.float32)                    # (1, 128)
    w2_t = jnp.pad(w2.T.astype(jnp.float32),
                   ((0, 0), (0, OUT_PAD - N_OUT)))                       # (128, 128)
    b2_2d = jnp.pad(b2.reshape(1, N_OUT).astype(jnp.float32),
                    ((0, 0), (0, OUT_PAD - N_OUT)))                      # (1, 128)

    # Double-buffered VMEM footprint -> explicit limit (<= 48 MiB for v7x).
    weight_bytes = (K_IN * HIDDEN * in_itemsize
                    + (HIDDEN + 1) * OUT_PAD * 4 + HIDDEN * 4)
    vmem_need = (2 * tile * K_IN * in_itemsize          # x double buffer
                 + 2 * tile * OUT_PAD * out_itemsize    # output double buffer
                 + 2 * weight_bytes)                    # resident operands
    vmem_limit = min(48 << 20, max(16 << 20, int(vmem_need * 1.5) + (2 << 20)))

    cost = pl.CostEstimate(
        flops=2 * grid[0] * tile * (K_IN * HIDDEN + HIDDEN * OUT_PAD),
        transcendentals=0,
        bytes_accessed=(n * K_IN * in_itemsize           # x stream (the bottleneck)
                        + weight_bytes                   # weights once
                        + n * OUT_PAD * out_itemsize),   # lane-dense output
    )

    out = pl.pallas_call(
        _mlp_kernel,
        out_shape=jax.ShapeDtypeStruct((n, OUT_PAD), out_dtype),
        grid_spec=pltpu.PrefetchScalarGridSpec(
            num_scalar_prefetch=0,
            grid=grid,
            in_specs=[
                pl.BlockSpec((tile, K_IN), lambda i: (i, 0)),        # x: streamed
                pl.BlockSpec((K_IN, HIDDEN), lambda i: (0, 0)),      # W1: resident
                pl.BlockSpec((1, HIDDEN), lambda i: (0, 0)),         # b1: resident
                pl.BlockSpec((HIDDEN, OUT_PAD), lambda i: (0, 0)),   # W2: resident
                pl.BlockSpec((1, OUT_PAD), lambda i: (0, 0)),        # b2: resident
            ],
            out_specs=pl.BlockSpec((tile, OUT_PAD), lambda i: (i, 0)),
        ),
        compiler_params=pltpu.CompilerParams(
            dimension_semantics=("parallel",),
            vmem_limit_bytes=vmem_limit,
        ),
        cost_estimate=cost,
    )(x, w1_t, b1_2d, w2_t, b2_2d)

    # TODO(synk): if the consumer is argmax / cross-entropy, hand it the padded
    # lane-dense (n, 128) block directly and fuse this slice there instead.
    return out[:, :N_OUT].astype(jnp.float32)


def _reference_forward(x_nchw, w1, b1, w2, b2):
    x = x_nchw.reshape(x_nchw.shape[0], -1).astype(jnp.float32)
    h = jnp.maximum(x @ w1.T + b1, 0.0)
    return h @ w2.T + b2


if __name__ == "__main__":
    key = jax.random.PRNGKey(0)
    k_x, k_w1, k_b1, k_w2, k_b2 = jax.random.split(key, 5)

    batch = 64  # one MNIST DataLoader batch
    # MNIST-shaped input (NCHW), roughly like Normalize((0.5,), (0.5,)).
    x = jax.random.uniform(k_x, (batch, 1, 28, 28), jnp.float32,
                           minval=-1.0, maxval=1.0)

    # nn.Linear-style uniform(-1/sqrt(fan_in), 1/sqrt(fan_in)) init.
    bound1 = 1.0 / (K_IN ** 0.5)
    bound2 = 1.0 / (HIDDEN ** 0.5)
    w1 = jax.random.uniform(k_w1, (HIDDEN, K_IN), jnp.float32, -bound1, bound1)
    b1 = jax.random.uniform(k_b1, (HIDDEN,), jnp.float32, -bound1, bound1)
    w2 = jax.random.uniform(k_w2, (N_OUT, HIDDEN), jnp.float32, -bound2, bound2)
    b2 = jax.random.uniform(k_b2, (N_OUT,), jnp.float32, -bound2, bound2)

    ref = _reference_forward(x, w1, b1, w2, b2)

    fwd = jax.jit(functools.partial(simple_nn_forward, tile_n=1024))

    # f32 activation stream — tight tolerance.
    logits_f32 = jax.block_until_ready(fwd(x, w1, b1, w2, b2))
    assert logits_f32.shape == (batch, N_OUT)
    assert jnp.allclose(logits_f32, ref, atol=2e-4, rtol=2e-4), "f32 mismatch"

    # bf16 activation stream ("upstream" produces bf16, so only the flatten
    # reshape remains on the hot path) — loosened tolerance for bf16 rounding.
    logits_bf16 = jax.block_until_ready(fwd(x.astype(jnp.bfloat16), w1, b1, w2, b2))
    assert logits_bf16.shape == (batch, N_OUT)
    assert jnp.allclose(logits_bf16, ref, atol=5e-2, rtol=5e-2), "bf16 mismatch"

    print("KERNEL_OK")
</pallas_src>

<mosaic_0001>
module attributes {stable_mosaic.version = 11 : i64} {
  func.func @_mlp_kernel(%arg0: i32, %arg1: memref<32x784xf32, #tpu.memory_space<vmem>>, %arg2: memref<784x128xf32, #tpu.memory_space<vmem>>, %arg3: memref<1x128xf32, #tpu.memory_space<vmem>>, %arg4: memref<128x128xf32, #tpu.memory_space<vmem>>, %arg5: memref<1x128xf32, #tpu.memory_space<vmem>>, %arg6: memref<32x128xf32, #tpu.memory_space<vmem>>) attributes {dimension_semantics = [#tpu.dimension_semantics<parallel>], iteration_bounds = array<i64: 2>, scalar_prefetch = 0 : i64, scratch_operands = 0 : i64, tpu.core_type = #tpu.core_type<tc>, window_params = [{transform_indices = @transform_0, window_bounds = array<i64: 32, 784>}, {pipeline_mode = #tpu.pipeline_mode<synchronous>, transform_indices = @transform_1, window_bounds = array<i64: 784, 128>}, {pipeline_mode = #tpu.pipeline_mode<synchronous>, transform_indices = @transform_2, window_bounds = array<i64: 1, 128>}, {pipeline_mode = #tpu.pipeline_mode<synchronous>, transform_indices = @transform_3, window_bounds = array<i64: 128, 128>}, {pipeline_mode = #tpu.pipeline_mode<synchronous>, transform_indices = @transform_4, window_bounds = array<i64: 1, 128>}, {transform_indices = @transform_5, window_bounds = array<i64: 32, 128>}]} {
    %c0 = arith.constant 0 : index
    %c0_0 = arith.constant 0 : index
    %0 = vector.load %arg1[%c0, %c0_0] : memref<32x784xf32, #tpu.memory_space<vmem>>, vector<32x784xf32>
    %c0_1 = arith.constant 0 : index
    %c0_2 = arith.constant 0 : index
    %1 = vector.load %arg2[%c0_1, %c0_2] : memref<784x128xf32, #tpu.memory_space<vmem>>, vector<784x128xf32>
    %cst = arith.constant dense<0.000000e+00> : vector<32x128xf32>
    %2 = tpu.matmul %0, %1, %cst {dimension_numbers = #tpu.dot_dimension_numbers<[1], [0], [0], [1], [0, 0, 1, 1], [], []>} : vector<32x784xf32>, vector<784x128xf32>, vector<32x128xf32> -> vector<32x128xf32>
    %c0_3 = arith.constant 0 : index
    %c0_4 = arith.constant 0 : index
    %3 = vector.load %arg3[%c0_3, %c0_4] : memref<1x128xf32, #tpu.memory_space<vmem>>, vector<1x128xf32>
    %4 = vector.broadcast %3 : vector<1x128xf32> to vector<32x128xf32>
    %5 = arith.addf %2, %4 : vector<32x128xf32>
    %cst_5 = arith.constant 0.000000e+00 : f32
    %6 = vector.broadcast %cst_5 : f32 to vector<32x128xf32>
    %7 = arith.maximumf %5, %6 : vector<32x128xf32>
    %c0_6 = arith.constant 0 : index
    %c0_7 = arith.constant 0 : index
    %8 = vector.load %arg4[%c0_6, %c0_7] : memref<128x128xf32, #tpu.memory_space<vmem>>, vector<128x128xf32>
    %cst_8 = arith.constant dense<0.000000e+00> : vector<32x128xf32>
    %9 = tpu.matmul %7, %8, %cst_8 {dimension_numbers = #tpu.dot_dimension_numbers<[1], [0], [0], [1], [0, 0, 1, 1], [], []>} : vector<32x128xf32>, vector<128x128xf32>, vector<32x128xf32> -> vector<32x128xf32>
    %c0_9 = arith.constant 0 : index
    %c0_10 = arith.constant 0 : index
    %10 = vector.load %arg5[%c0_9, %c0_10] : memref<1x128xf32, #tpu.memory_space<vmem>>, vector<1x128xf32>
    %11 = vector.broadcast %10 : vector<1x128xf32> to vector<32x128xf32>
    %12 = arith.addf %9, %11 : vector<32x128xf32>
    %c0_11 = arith.constant 0 : index
    %c0_12 = arith.constant 0 : index
    %13 = vector.load %arg6[%c0_11, %c0_12] : memref<32x128xf32, #tpu.memory_space<vmem>>, vector<32x128xf32>
    tpu.vector_store %arg6[%c0_11, %c0_12], %12 {strides = array<i32>} : memref<32x128xf32, #tpu.memory_space<vmem>>, vector<32x128xf32>,
    return
  }
  func.func @transform_0(%arg0: i32) -> (i32, i32) {
    %c0_i32 = arith.constant 0 : i32
    %c0_i32_0 = arith.constant 0 : i32
    return %arg0, %c0_i32 : i32, i32
  }
  func.func @transform_1(%arg0: i32) -> (i32, i32) {
    %c0_i32 = arith.constant 0 : i32
    %c0_i32_0 = arith.constant 0 : i32
    %c0_i32_1 = arith.constant 0 : i32
    return %c0_i32, %c0_i32_0 : i32, i32
  }
  func.func @transform_2(%arg0: i32) -> (i32, i32) {
    %c0_i32 = arith.constant 0 : i32
    %c0_i32_0 = arith.constant 0 : i32
    %c0_i32_1 = arith.constant 0 : i32
    return %c0_i32, %c0_i32_0 : i32, i32
  }
  func.func @transform_3(%arg0: i32) -> (i32, i32) {
    %c0_i32 = arith.constant 0 : i32
    %c0_i32_0 = arith.constant 0 : i32
    %c0_i32_1 = arith.constant 0 : i32
    return %c0_i32, %c0_i32_0 : i32, i32
  }
  func.func @transform_4(%arg0: i32) -> (i32, i32) {
    %c0_i32 = arith.constant 0 : i32
    %c0_i32_0 = arith.constant 0 : i32
    %c0_i32_1 = arith.constant 0 : i32
    return %c0_i32, %c0_i32_0 : i32, i32
  }
  func.func @transform_5(%arg0: i32) -> (i32, i32) {
    %c0_i32 = arith.constant 0 : i32
    %c0_i32_0 = arith.constant 0 : i32
    return %arg0, %c0_i32 : i32, i32
  }
}

</mosaic_0001>

<bundles_post_ra>
// kernel: simple_nn_forward.1
= control target key start
LH: loop header
LB: loop body
LE: loop exit
PB: predicated region body
PF: predicated region fallthrough
CT: control target
= control target key end

     0   :  { %s1291_s18 = smov 0   ;;  %s1700_s0 = inlined_call_operand.vmem [shape: f32[64,784], index: 0, kind: input, shape index: {}]   ;;  %s1701_s1 = inlined_call_operand.vmem [shape: f32[784,128], index: 1, kind: input, shape index: {}]   ;;  %s1702_s2 = inlined_call_operand.vmem [shape: f32[1,128], index: 2, kind: input, shape index: {}]   ;;  %s1703_s3 = inlined_call_operand.vmem [shape: f32[128,128], index: 3, kind: input, shape index: {}]   ;;  %s1704_s4 = inlined_call_operand.vmem [shape: f32[1,128], index: 4, kind: input, shape index: {}]   ;;  %s1705_s5 = inlined_call_operand.vmem [shape: f32[64,128], index: 5, kind: output, shape index: {}]  }
   0x1 LB: > { %s889_s19 = sadd.s32 4294967295, %s1259_s18   ;;  %p893_p0 = scmp.ge.s32.totalorder %s1259_s18, 1  ;;  %s1259_s18 = sphi %s1291_s18, %s15_s18  }
   0x2   : > { %p189_p1 = scmp.lt.s32.totalorder %s1259_s18, 3 }
   0x4   : > { %p190_p2 = pnand %p893_p0, %p189_p1 }
   0x5   : > { %v275_v0 = vld [vmem:[%s1701_s1 + $0x80] sm:$0xff] (!%p190_p2)  ;;  %v276_v1 = vld [vmem:[%s1701_s1 + $0x88] sm:$0xff] (!%p190_p2)  ;;  %v277_v11 = vld [vmem:[%s1701_s1 + $0x90] sm:$0xff] (!%p190_p2)  ;;  %s1326_s13 = sshll.u32 (!%p190_p2), %s889_s19, 2  ;;  %vm364_vm0 = vcmask (!%p190_p2), 130048  }
   0x6   : > { %193 = sbr.rel (%p190_p2) target bundleno = 521 (0x209), region = 40  ;;  %v259_v2 = vld [vmem:[%s1701_s1] sm:$0xff] (!%p190_p2)  ;;  %v1112_v3 = vpack.c.bf16 (!%p190_p2), %v276_v1, %v275_v0  ;;  %v260_v4 = vld [vmem:[%s1701_s1 + $0x8] sm:$0xff] (!%p190_p2)  ;;  %v278_v13 = vld [vmem:[%s1701_s1 + $0x98] sm:$0xff] (!%p190_p2)  ;;  %p219_p3 = scmp.lt.s32.totalorder (!%p190_p2), %s1326_s13, 7 }
   0x7   : > { %v307_v5 = vld [vmem:[%s1701_s1 + $0x180] sm:$0xff] (!%p190_p2)  ;;  %v308_v6 = vld [vmem:[%s1701_s1 + $0x188] sm:$0xff] (!%p190_p2)  ;;  %v1114_v7 = vpack.c.bf16 (!%p190_p2), %v260_v4, %v259_v2  ;;  %v261_v14 = vld [vmem:[%s1701_s1 + $0x10] sm:$0xff] (!%p190_p2)  ;;  %v1116_v16 = vpack.c.bf16 (!%p190_p2), %v278_v13, %v277_v11 }
   0x8   : > { %v1144_v8 = vpack.c.bf16 (!%p190_p2), %v308_v6, %v307_v5  ;;  %v291_v9 = vld [vmem:[%s1701_s1 + $0x100] sm:$0xff] (!%p190_p2)  ;;  %v292_v10 = vld [vmem:[%s1701_s1 + $0x108] sm:$0xff] (!%p190_p2)  ;;  %1113 = vmatprep.subr.bf16.mxu0 (!%p190_p2), %v1112_v3  ;;  %v262_v15 = vld [vmem:[%s1701_s1 + $0x18] sm:$0xff] (!%p190_p2) }
   0x9   : > { %v1146_v12 = vpack.c.bf16 (!%p190_p2), %v292_v10, %v291_v9  ;;  %1115 = vmatpush3.bf16.msra.mxu0 (!%p190_p2), %v1114_v7  ;;  %v1118_v17 = vpack.c.bf16 (!%p190_p2), %v262_v15, %v261_v14  ;;  %v309_v18 = vld [vmem:[%s1701_s1 + $0x190] sm:$0xff] (!%p190_p2)  ;;  %v310_v19 = vld [vmem:[%s1701_s1 + $0x198] sm:$0xff] (!%p190_p2)  ;;  %v279_v23 = vld [vmem:[%s1701_s1 + $0xa0] sm:$0xff] (!%p190_p2) }
   0xa   : > { %1145 = vmatprep.subr.bf16.mxu1 (!%p190_p2), %v1144_v8  ;;  %v293_v20 = vld [vmem:[%s1701_s1 + $0x110] sm:$0xff] (!%p190_p2)  ;;  %v1148_v21 = vpack.c.bf16 (!%p190_p2), %v310_v19, %v309_v18  ;;  %v294_v22 = vld [vmem:[%s1701_s1 + $0x118] sm:$0xff] (!%p190_p2)  ;;  %v280_v24 = vld [vmem:[%s1701_s1 + $0xa8] sm:$0xff] (!%p190_p2)  ;;  %1117 = vmatprep.subr.bf16.mxu0 (!%p190_p2), %v1116_v16 }
   0xb   : > { %1147 = vmatpush3.bf16.msra.mxu1 (!%p190_p2), %v1146_v12  ;;  %v1150_v25 = vpack.c.bf16 (!%p190_p2), %v294_v22, %v293_v20  ;;  %v1120_v26 = vpack.c.bf16 (!%p190_p2), %v280_v24, %v279_v23  ;;  %v263_v27 = vld [vmem:[%s1701_s1 + $0x20] sm:$0xff] (!%p190_p2)  ;;  %v264_v28 = vld [vmem:[%s1701_s1 + $0x28] sm:$0xff] (!%p190_p2)  ;;  %v281_v35 = vld [vmem:[%s1701_s1 + $0xb0] sm:$0xff] (!%p190_p2) }
   0xc   : > { %v311_v29 = vld [vmem:[%s1701_s1 + $0x1a0] sm:$0xff] (!%p190_p2)  ;;  %1149 = vmatprep.subr.bf16.mxu1 (!%p190_p2), %v1148_v21  ;;  %v312_v30 = vld [vmem:[%s1701_s1 + $0x1a8] sm:$0xff] (!%p190_p2)  ;;  %v1122_v33 = vpack.c.bf16 (!%p190_p2), %v264_v28, %v263_v27  ;;  %v282_v36 = vld [vmem:[%s1701_s1 + $0xb8] sm:$0xff] (!%p190_p2) }
   0xd   : > { %v295_v31 = vld [vmem:[%s1701_s1 + $0x120] sm:$0xff]  ;;  %v296_v32 = vld [vmem:[%s1701_s1 + $0x128] sm:$0xff]  ;;  %1119 = vmatpush3.bf16.msra.mxu0 %v1118_v17  ;;  %v1152_v34 = vpack.c.bf16 %v312_v30, %v311_v29  ;;  %v265_v37 = vld [vmem:[%s1701_s1 + $0x30] sm:$0xff]  ;;  %v1124_v39 = vpack.c.bf16 %v282_v36, %v281_v35  ;;  %s1707_s13 = smov (!%p219_p3, %s1326_s13), 7 }
   0xe   : > { %1121 = vmatprep.subr.bf16.mxu0 %v1120_v26  ;;  %v1154_v38 = vpack.c.bf16 %v296_v32, %v295_v31  ;;  %v266_v40 = vld [vmem:[%s1701_s1 + $0x38] sm:$0xff]  ;;  %v313_v41 = vld [vmem:[%s1701_s1 + $0x1b0] sm:$0xff]  ;;  %v283_v46 = vld [vmem:[%s1701_s1 + $0xc0] sm:$0xff]  ;;  %s1244_s29 = smul.u32 56, %s1707_s13  ;;  %s897_s28 = sshll.u32 %s1707_s13, 3 }
   0xf   : > { %1151 = vmatpush3.bf16.msra.mxu1 %v1150_v25  ;;  %v314_v42 = vld [vmem:[%s1701_s1 + $0x1b8] sm:$0xff]  ;;  %v297_v44 = vld [vmem:[%s1701_s1 + $0x130] sm:$0xff]  ;;  %v284_v47 = vld [vmem:[%s1701_s1 + $0xc8] sm:$0xff]  ;;  %v1126_v48 = vpack.c.bf16 %v266_v40, %v265_v37  ;;  %s229_s9 = scalar_lea.vmem %s1705_s5, %s897_s28 }
  0x10   : > { %1153 = vmatprep.subr.bf16.mxu1 %v1152_v34  ;;  %v1156_v43 = vpack.c.bf16 %v314_v42, %v313_v41  ;;  %v298_v45 = vld [vmem:[%s1701_s1 + $0x138] sm:$0xff]  ;;  %v315_v49 = vld [vmem:[%s1701_s1 + $0x1c0] sm:$0xff]  ;;  %v316_v50 = vld [vmem:[%s1701_s1 + $0x1c8] sm:$0xff]  ;;  %v1128_v52 = vpack.c.bf16 %v284_v47, %v283_v46  ;;  %s1452_s25 = scalar_lea.vmem %s1700_s0, %s1244_s29 }
  0x11   : > { %1123 = vmatpush3.bf16.msra.mxu0 %v1122_v33  ;;  %v1158_v51 = vpack.c.bf16 %v298_v45, %v297_v44  ;;  %v267_v53 = vld [vmem:[%s1701_s1 + $0x40] sm:$0xff]  ;;  %v268_v54 = vld [vmem:[%s1701_s1 + $0x48] sm:$0xff]  ;;  %v1160_v56 = vpack.c.bf16 %v316_v50, %v315_v49  ;;  %v285_v58 = vld [vmem:[%s1701_s1 + $0xd0] sm:$0xff] }
  0x12   : > { %1125 = vmatprep.subr.bf16.mxu0 %v1124_v39  ;;  %v299_v55 = vld [vmem:[%s1701_s1 + $0x140] sm:$0xff]  ;;  %v300_v57 = vld [vmem:[%s1701_s1 + $0x148] sm:$0xff]  ;;  %v286_v59 = vld [vmem:[%s1701_s1 + $0xd8] sm:$0xff]  ;;  %v1130_v62 = vpack.c.bf16 %v268_v54, %v267_v53 }
  0x13   : > { %1155 = vmatpush3.bf16.msra.mxu1 %v1154_v38  ;;  %v317_v60 = vld [vmem:[%s1701_s1 + $0x1d0] sm:$0xff]  ;;  %v318_v61 = vld [vmem:[%s1701_s1 + $0x1d8] sm:$0xff]  ;;  %v1162_v63 = vpack.c.bf16 %v300_v57, %v299_v55  ;;  %v1132_v0 = vpack.c.bf16 %v286_v59, %v285_v58  ;;  %v287_v6 = vld [vmem:[%s1701_s1 + $0xe0] sm:$0xff] }
  0x14   : > { %1157 = vmatprep.subr.bf16.mxu1 %v1156_v43  ;;  %v269_v1 = vld [vmem:[%s1701_s1 + $0x50] sm:$0xff]  ;;  %v270_v2 = vld [vmem:[%s1701_s1 + $0x58] sm:$0xff]  ;;  %v1164_v4 = vpack.c.bf16 %v318_v61, %v317_v60  ;;  %v288_v7 = vld [vmem:[%s1701_s1 + $0xe8] sm:$0xff] }
  0x15   : > { %1127 = vmatpush3.bf16.msra.mxu0 %v1126_v48  ;;  %v301_v3 = vld [vmem:[%s1701_s1 + $0x150] sm:$0xff]  ;;  %v302_v5 = vld [vmem:[%s1701_s1 + $0x158] sm:$0xff]  ;;  %v319_v8 = vld [vmem:[%s1701_s1 + $0x1e0] sm:$0xff]  ;;  %v1134_v10 = vpack.c.bf16 %v270_v2, %v269_v1  ;;  %v1136_v14 = vpack.c.bf16 %v288_v7, %v287_v6 }
  0x16   : > { %1129 = vmatprep.subr.bf16.mxu0 %v1128_v52  ;;  %v320_v9 = vld [vmem:[%s1701_s1 + $0x1e8] sm:$0xff]  ;;  %v271_v11 = vld [vmem:[%s1701_s1 + $0x60] sm:$0xff]  ;;  %v1166_v13 = vpack.c.bf16 %v302_v5, %v301_v3  ;;  %v289_v19 = vld [vmem:[%s1701_s1 + $0xf0] sm:$0xff] }
  0x17   : > { %1159 = vmatpush3.bf16.msra.mxu1 %v1158_v51  ;;  %v232_v12 = vld [vmem:[%s1452_s25 + $0x8] sm:$0xff]  ;;  %v303_v16 = vld [vmem:[%s1701_s1 + $0x160] sm:$0xff]  ;;  %v1168_v18 = vpack.c.bf16 %v320_v9, %v319_v8  ;;  %v290_v20 = vld [vmem:[%s1701_s1 + $0xf8] sm:$0xff] }
  0x18   : > { %1161 = vmatprep.subr.bf16.mxu1 %v1160_v56  ;;  %v272_v15 = vld [vmem:[%s1701_s1 + $0x68] sm:$0xff]  ;;  %441 = vmatprep.mubr.f32.mxu0 %v232_v12  ;;  %v234_v21 = vld [vmem:[%s1452_s25 + $0x18] sm:$0xff]  ;;  %v321_v22 = vld [vmem:[%s1701_s1 + $0x1f0] sm:$0xff]  ;;  %v1140_v26 = vpack.c.bf16 %v290_v20, %v289_v19 }
  0x19   : > { %1131 = vmatpush3.bf16.msra.mxu0 %v1130_v62  ;;  %v304_v17 = vld [vmem:[%s1701_s1 + $0x168] sm:$0xff]  ;;  %v322_v23 = vld [vmem:[%s1701_s1 + $0x1f8] sm:$0xff]  ;;  %526 = vmatprep.mubr.f32.mxu1 %v234_v21  ;;  %v1138_v24 = vpack.c.bf16 %v272_v15, %v271_v11  ;;  %v273_v27 = vld [vmem:[%s1701_s1 + $0x70] sm:$0xff] }
  0x1a   : > { %1133 = vmatprep.subr.bf16.mxu0 %v1132_v0  ;;  %v1170_v25 = vpack.c.bf16 %v304_v17, %v303_v16  ;;  %v274_v28 = vld [vmem:[%s1701_s1 + $0x78] sm:$0xff]  ;;  %v305_v29 = vld [vmem:[%s1701_s1 + $0x170] sm:$0xff]  ;;  %v1172_v30 = vpack.c.bf16 %v322_v23, %v321_v22  ;;  %v339_v32 = vld [vmem:[%s1701_s1 + $0x280] sm:$0xff] }
  0x1b   : > { %1163 = vmatpush3.bf16.msra.mxu1 %v1162_v63  ;;  %v306_v31 = vld [vmem:[%s1701_s1 + $0x178] sm:$0xff]  ;;  %v340_v33 = vld [vmem:[%s1701_s1 + $0x288] sm:$0xff]  ;;  %v1142_v34 = vpack.c.bf16 %v274_v28, %v273_v27  ;;  %v323_v37 = vld [vmem:[%s1701_s1 + $0x200] sm:$0xff] }
  0x1c   : > { %1165 = vmatprep.subr.bf16.mxu1 %v1164_v4  ;;  %v1174_v35 = vpack.c.bf16 %v306_v31, %v305_v29  ;;  %v1176_v36 = vpack.c.bf16 %v340_v33, %v339_v32  ;;  %v324_v38 = vld [vmem:[%s1701_s1 + $0x208] sm:$0xff]  ;;  %v341_v39 = vld [vmem:[%s1701_s1 + $0x290] sm:$0xff]  ;;  %v342_v40 = vld [vmem:[%s1701_s1 + $0x298] sm:$0xff] }
  0x1d   : > { %1135 = vmatpush3.bf16.msra.mxu0 %v1134_v10  ;;  %v231_v41 = vld [vmem:[%s1452_s25] sm:$0xff]  ;;  %v1178_v42 = vpack.c.bf16 %v324_v38, %v323_v37  ;;  %v233_v43 = vld [vmem:[%s1452_s25 + $0x10] sm:$0xff]  ;;  %v1180_v44 = vpack.c.bf16 %v342_v40, %v341_v39  ;;  %v326_v46 = vld [vmem:[%s1701_s1 + $0x218] sm:$0xff] }
  0x1e   : > { %1137 = vmatprep.subr.bf16.mxu0 %v1136_v14  ;;  %v325_v45 = vld [vmem:[%s1701_s1 + $0x210] sm:$0xff]  ;;  %v343_v47 = vld [vmem:[%s1701_s1 + $0x2a0] sm:$0xff]  ;;  %v344_v48 = vld [vmem:[%s1701_s1 + $0x2a8] sm:$0xff] }
  0x1f   : > { %1167 = vmatpush3.bf16.msra.mxu1 %v1166_v13  ;;  %v239_v49 = vld [vmem:[%s1452_s25 + $0x40] sm:$0xff]  ;;  %v241_v50 = vld [vmem:[%s1452_s25 + $0x50] sm:$0xff]  ;;  %v356_v52 = vld [vmem:[%s1701_s1 + $0x308] sm:$0xff]  ;;  %v1182_v53 = vpack.c.bf16 %v326_v46, %v325_v45  ;;  %v1184_v56 = vpack.c.bf16 %v344_v48, %v343_v47 }
  0x20   : > { %1169 = vmatprep.subr.bf16.mxu1 %v1168_v18  ;;  %v355_v51 = vld [vmem:[%s1701_s1 + $0x300] sm:$0xff]  ;;  %v238_v54 = vld [vmem:[%s1452_s25 + $0x38] sm:$0xff]  ;;  %v328_v58 = vld [vmem:[%s1701_s1 + $0x228] sm:$0xff] }
  0x21   : > { %1139 = vmatpush3.bf16.msra.mxu0 %v1138_v24  ;;  %v1208_v55 = vpack.c.bf16 %v356_v52, %v355_v51  ;;  %v327_v57 = vld [vmem:[%s1701_s1 + $0x220] sm:$0xff]  ;;  %v240_v59 = vld [vmem:[%s1452_s25 + $0x48] sm:$0xff]  ;;  %v345_v60 = vld [vmem:[%s1701_s1 + $0x2b0] sm:$0xff] }
  0x22   : > { %1141 = vmatprep.subr.bf16.mxu0 %v1140_v26  ;;  %v346_v61 = vld [vmem:[%s1701_s1 + $0x2b8] sm:$0xff]  ;;  %v248_v63 = vld [vmem:[%s1452_s25 + $0x88] sm:$0xff]  ;;  %v1186_v0 = vpack.c.bf16 %v328_v58, %v327_v57  ;;  %v245_v1 = vld [vmem:[%s1452_s25 + $0x70] sm:$0xff] }
  0x23   : > { %1171 = vmatpush3.bf16.msra.mxu1 %v1170_v25  ;;  %v246_v62 = vld [vmem:[%s1452_s25 + $0x78] sm:$0xff]  ;;  %v1188_v2 = vpack.c.bf16 %v346_v61, %v345_v60  ;;  %v329_v3 = vld [vmem:[%s1701_s1 + $0x230] sm:$0xff]  ;;  %v247_v5 = vld [vmem:[%s1452_s25 + $0x80] sm:$0xff] }
  0x24   : > { %1173 = vmatprep.subr.bf16.mxu1 %v1172_v30  ;;  %v330_v4 = vld [vmem:[%s1701_s1 + $0x238] sm:$0xff]  ;;  %v347_v6 = vld [vmem:[%s1701_s1 + $0x2c0] sm:$0xff]  ;;  %v348_v7 = vld [vmem:[%s1701_s1 + $0x2c8] sm:$0xff] }
  0x25   : > { %1143 = vmatpush3.bf16.msra.mxu0 %v1142_v34  ;;  %v253_v8 = vld [vmem:[%s1452_s25 + $0xb0] sm:$0xff]  ;;  %v255_v9 = vld [vmem:[%s1452_s25 + $0xc0] sm:$0xff]  ;;  %v1190_v10 = vpack.c.bf16 %v330_v4, %v329_v3  ;;  %v252_v11 = vld [vmem:[%s1452_s25 + $0xa8] sm:$0xff]  ;;  %v1192_v12 = vpack.c.bf16 %v348_v7, %v347_v6 }
  0x26   : > { %1177 = vmatprep.subr.bf16.mxu0 %v1176_v36  ;;  %v331_v13 = vld [vmem:[%s1701_s1 + $0x240] sm:$0xff]  ;;  %v332_v14 = vld [vmem:[%s1701_s1 + $0x248] sm:$0xff]  ;;  %v254_v15 = vld [vmem:[%s1452_s25 + $0xb8] sm:$0xff] }
  0x27   : > { %1175 = vmatpush3.bf16.msra.mxu1 %v1174_v35  ;;  %v349_v16 = vld [vmem:[%s1701_s1 + $0x2d0] sm:$0xff]  ;;  %v350_v17 = vld [vmem:[%s1701_s1 + $0x2d8] sm:$0xff]  ;;  %v236_v18 = vld [vmem:[%s1452_s25 + $0x28] sm:$0xff]  ;;  %v1194_v20 = vpack.c.bf16 %v332_v14, %v331_v13 }
  0x28   : > { %442 = vmatmul.mubr.f32.vlgmr.msra.gmra.mrb[0].mxu0 %v231_v41  ;;  %1209 = vmatprep.subr.bf16.mxu1 %v1208_v55  ;;  %v237_v19 = vld [vmem:[%s1452_s25 + $0x30] sm:$0xff]  ;;  %v1196_v21 = vpack.c.bf16 %v350_v17, %v349_v16  ;;  %v334_v23 = vld [vmem:[%s1701_s1 + $0x258] sm:$0xff]  ;;  %v244_v24 = vld [vmem:[%s1452_s25 + $0x68] sm:$0xff] }
  0x29   : > { %1179 = vmatpush3.bf16.msra.mxu0 %v1178_v42  ;;  %446 = vmatprep.mubr.f32.mxu0 %v239_v49  ;;  %v333_v22 = vld [vmem:[%s1701_s1 + $0x250] sm:$0xff]  ;;  %v351_v25 = vld [vmem:[%s1701_s1 + $0x2e0] sm:$0xff]  ;;  %v352_v26 = vld [vmem:[%s1701_s1 + $0x2e8] sm:$0xff] }
  0x2a   : > { %527 = vmatmul.mubr.f32.vlgmr.msra.gmra.mrb[0].mxu1 %v233_v43  ;;  %1181 = vmatprep.subr.bf16.mxu0 %v1180_v44  ;;  %v251_v27 = vld [vmem:[%s1452_s25 + $0xa0] sm:$0xff]  ;;  %v1198_v28 = vpack.c.bf16 %v334_v23, %v333_v22  ;;  %v1200_v29 = vpack.c.bf16 %v352_v26, %v351_v25  ;;  %v336_v31 = vld [vmem:[%s1701_s1 + $0x268] sm:$0xff]  ;;  %v258_v32 = vld [vmem:[%s1452_s25 + $0xd8] sm:$0xff] }
  0x2b   : > { %531 = vmatprep.mubr.f32.mxu1 %v241_v50  ;;  %1211 = vmatpush3.bf16.msra.mxu1 %v1208_v55  ;;  %v335_v30 = vld [vmem:[%s1701_s1 + $0x260] sm:$0xff]  ;;  %v353_v33 = vld [vmem:[%s1701_s1 + $0x2f0] sm:$0xff]  ;;  %v354_v34 = vld [vmem:[%s1701_s1 + $0x2f8] sm:$0xff] }
  0x2c   : > { %447 = vmatmul.mubr.f32.gmra.mrb[2].mxu0 %v238_v54  ;;  %v1202_v35 = vpack.c.bf16 %v336_v31, %v335_v30  ;;  %v1204_v36 = vpack.c.bf16 %v354_v34, %v353_v33  ;;  %v337_v37 = vld [vmem:[%s1701_s1 + $0x270] sm:$0xff]  ;;  %v338_v38 = vld [vmem:[%s1701_s1 + $0x278] sm:$0xff]  ;;  %v235_v40 = vld [vmem:[%s1452_s25 + $0x20] sm:$0xff] }
  0x2d   : > { %1183 = vmatpush3.bf16.msra.mxu0 %v1182_v53  ;;  %451 = vmatprep.mubr.f32.mxu0 %v246_v62  ;;  %v1206_v39 = vpack.c.bf16 %v338_v38, %v337_v37  ;;  %v243_v41 = vld [vmem:[%s1452_s25 + $0x60] sm:$0xff]  ;;  %v242_v42 = vld [vmem:[%s1452_s25 + $0x58] sm:$0xff]  ;;  %v249_v44 = vld [vmem:[%s1452_s25 + $0x90] sm:$0xff] }
  0x2e   : > { %532 = vmatmul.mubr.f32.gmra.mrb[2].mxu1 %v240_v59  ;;  %1185 = vmatprep.subr.bf16.mxu0 %v1184_v56  ;;  %v250_v43 = vld [vmem:[%s1452_s25 + $0x98] sm:$0xff]  ;;  %v257_v45 = vld [vmem:[%s1452_s25 + $0xd0] sm:$0xff]  ;;  %v256_v46 = vld [vmem:[%s1452_s25 + $0xc8] sm:$0xff] }
  0x2f   : > { %536 = vmatprep.mubr.f32.mxu1 %v248_v63  ;;  %v721_v47 = vld [vmem:[%s1703_s3] sm:$0xff]  ;;  %v722_v48 = vld [vmem:[%s1703_s3 + $0x8] sm:$0xff]  ;;  %v723_v49 = vld [vmem:[%s1703_s3 + $0x10] sm:$0xff] }
  0x30   : > { %452 = vmatmul.mubr.f32.gmra.mrb[4].mxu0 %v245_v1  ;;  %v1212_v50 = vpack.c.bf16 %v722_v48, %v721_v47  ;;  %v724_v51 = vld [vmem:[%s1703_s3 + $0x18] sm:$0xff]  ;;  %v725_v53 = vld [vmem:[%s1703_s3 + $0x20] sm:$0xff]  ;;  %v726_v54 = vld [vmem:[%s1703_s3 + $0x28] sm:$0xff] }
  0x31   : > { %1187 = vmatpush3.bf16.msra.mxu0 %v1186_v0  ;;  %456 = vmatprep.mubr.f32.mxu0 %v253_v8  ;;  %v1216_v52 = vpack.c.bf16 %v724_v51, %v723_v49  ;;  %v1220_v55 = vpack.c.bf16 %v726_v54, %v725_v53  ;;  %v727_v56 = vld [vmem:[%s1703_s3 + $0x30] sm:$0xff]  ;;  %v728_v57 = vld [vmem:[%s1703_s3 + $0x38] sm:$0xff]  ;;  %v729_v59 = vld [vmem:[%s1703_s3 + $0x40] sm:$0xff] }
  0x32   : > { %537 = vmatmul.mubr.f32.gmra.mrb[4].mxu1 %v247_v5  ;;  %1189 = vmatprep.subr.bf16.mxu0 %v1188_v2  ;;  %v1224_v58 = vpack.c.bf16 %v728_v57, %v727_v56  ;;  %v730_v60 = vld [vmem:[%s1703_s3 + $0x48] sm:$0xff]  ;;  %v731_v62 = vld [vmem:[%s1703_s3 + $0x50] sm:$0xff]  ;;  %v732_v63 = vld [vmem:[%s1703_s3 + $0x58] sm:$0xff] }
  0x33   : > { %541 = vmatprep.mubr.f32.mxu1 %v255_v9  ;;  %1213 = vmatprep.subr.bf16.mxu1 %v1212_v50  ;;  %v1228_v61 = vpack.c.bf16 %v730_v60, %v729_v59  ;;  %v1232_v0 = vpack.c.bf16 %v732_v63, %v731_v62  ;;  %v733_v1 = vld [vmem:[%s1703_s3 + $0x60] sm:$0xff]  ;;  %v734_v2 = vld [vmem:[%s1703_s3 + $0x68] sm:$0xff]  ;;  %v735_v4 = vld [vmem:[%s1703_s3 + $0x70] sm:$0xff] }
  0x34   : > { %457 = vmatmul.mubr.f32.gmra.mrb[6].mxu0 %v252_v11  ;;  %v1236_v3 = vpack.c.bf16 %v734_v2, %v733_v1  ;;  %v736_v5 = vld [vmem:[%s1703_s3 + $0x78] sm:$0xff]  ;;  %v898_v8 = vld [vmem:[%s1702_s2] ss:$0 sm:$0xff] }
  0x35   : > { %1191 = vmatpush3.bf16.msra.mxu0 %v1190_v10  ;;  %611 = vmatprep.mubr.f32.mxu0 %v236_v18  ;;  %v1240_v6 = vpack.c.bf16 %v736_v5, %v735_v4  ;;  %v903_v4 = vld [vmem:[%s1704_s4] ss:$0 sm:$0xff] }
  0x36   : > { %542 = vmatmul.mubr.f32.gmra.mrb[6].mxu1 %v254_v15  ;;  %1193 = vmatprep.subr.bf16.mxu0 %v1192_v12 }
  0x37   : > { %1068 = vmatprep.mubr.msk.f32.mxu1 %vm364_vm0, %v237_v19 }
  0x39   : > { %1195 = vmatpush3.bf16.msra.mxu0 %v1194_v20 }
  0x3a   : > { %1069 = vmatmul.mubr.msk.f32.vlgmr.msra.gmra.mrb[8].mxu1 %vm364_vm0, %v244_v24  ;;  %1197 = vmatprep.subr.bf16.mxu0 %v1196_v21 }
  0x3b   : > { %1071 = vmatprep.mubr.msk.f32.mxu1 %vm364_vm0, %v251_v27  ;;  %1215 = vmatpush3.bf16.msra.mxu1 %v1212_v50 }
  0x3c   : > { %1217 = vmatprep.subr.bf16.mxu1 %v1216_v52 }
  0x3d   : > { %1199 = vmatpush3.bf16.msra.mxu0 %v1198_v28 }
  0x3e   : > { %1072 = vmatmul.mubr.msk.f32.gmra.mrb[10].mxu1 %vm364_vm0, %v258_v32  ;;  %1201 = vmatprep.subr.bf16.mxu0 %v1200_v29 }
  0x3f   : > { %1219 = vmatpush3.bf16.msra.mxu1 %v1216_v52 }
  0x40   : > { %1221 = vmatprep.subr.bf16.mxu1 %v1220_v55 }
  0x41   : > { %1203 = vmatpush3.bf16.msra.mxu0 %v1202_v35 }
  0x42   : > { %1205 = vmatprep.subr.bf16.mxu0 %v1204_v36 }
  0x43   : > { %1223 = vmatpush3.bf16.msra.mxu1 %v1220_v55 }
  0x44   : > { %1225 = vmatprep.subr.bf16.mxu1 %v1224_v58 }
  0x45   : > { %1207 = vmatpush3.bf16.msra.mxu0 %v1206_v39 }
  0x47   : > { %1227 = vmatpush3.bf16.msra.mxu1 %v1224_v58 }
  0x48   : > { %612 = vmatmul.mubr.f32.vlgmr.msra.gmra.mrb[8].mxu0 %v235_v40  ;;  %1229 = vmatprep.subr.bf16.mxu1 %v1228_v61 }
  0x49   : > { %616 = vmatprep.mubr.f32.mxu0 %v243_v41 }
  0x4b   : > { %1231 = vmatpush3.bf16.msra.mxu1 %v1228_v61 }
  0x4c   : > { %617 = vmatmul.mubr.f32.gmra.mrb[10].mxu0 %v242_v42  ;;  %1233 = vmatprep.subr.bf16.mxu1 %v1232_v0 }
  0x4d   : > { %621 = vmatprep.mubr.f32.mxu0 %v250_v43 }
  0x4f   : > { %1235 = vmatpush3.bf16.msra.mxu1 %v1232_v0 }
  0x50   : > { %622 = vmatmul.mubr.f32.gmra.mrb[12].mxu0 %v249_v44  ;;  %1237 = vmatprep.subr.bf16.mxu1 %v1236_v3 }
  0x51   : > { %626 = vmatprep.mubr.f32.mxu0 %v257_v45 }
  0x53   : > { %1239 = vmatpush3.bf16.msra.mxu1 %v1236_v3 }
  0x54   : > { %627 = vmatmul.mubr.f32.gmra.mrb[14].mxu0 %v256_v46  ;;  %1241 = vmatprep.subr.bf16.mxu1 %v1240_v6 }
  0x57   : > { %1243 = vmatpush3.bf16.msra.mxu1 %v1240_v6 }
  0xfb   : > { %v938_v7 = vpop.f32.mrb[0].mxu0 }
  0xfc   : > { %v939_v9 = vpop.f32.mrb[1].mxu0 }
  0xfd   : > { %v982_v10 = vpop.f32.mrb[0].mxu1  ;;  %v940_v11 = vadd.f32 %v939_v9, %v938_v7 }
  0xfe   : > { %v983_v12 = vpop.f32.mrb[1].mxu1 }
  0xff   : > { %v984_v13 = vadd.f32 %v983_v12, %v982_v10  ;;  %v444_v14 = vadd.f32 %v940_v11, %v898_v8  ;;  %v941_v15 = vpop.f32.mrb[2].mxu0 }
 0x100   : > { %v942_v16 = vpop.f32.mrb[3].mxu0 }
 0x101   : > { %v985_v17 = vpop.f32.mrb[2].mxu1  ;;  %v529_v18 = vadd.f32 %v984_v13, %v444_v14  ;;  %v943_v19 = vadd.f32 %v942_v16, %v941_v15 }
 0x102   : > { %v986_v20 = vpop.f32.mrb[3].mxu1 }
 0x103   : > { %v987_v21 = vadd.f32 %v986_v20, %v985_v17  ;;  %v449_v22 = vadd.f32 %v943_v19, %v898_v8  ;;  %v944_v23 = vpop.f32.mrb[4].mxu0 }
 0x104   : > { %v945_v24 = vpop.f32.mrb[5].mxu0 }
 0x105   : > { %v988_v25 = vpop.f32.mrb[4].mxu1  ;;  %v534_v26 = vadd.f32 %v987_v21, %v449_v22  ;;  %v946_v27 = vadd.f32 %v945_v24, %v944_v23 }
 0x106   : > { %v989_v28 = vpop.f32.mrb[5].mxu1 }
 0x107   : > { %v990_v29 = vadd.f32 %v989_v28, %v988_v25  ;;  %v454_v30 = vadd.f32 %v946_v27, %v898_v8  ;;  %v947_v31 = vpop.f32.mrb[6].mxu0 }
 0x108   : > { %v948_v32 = vpop.f32.mrb[7].mxu0 }
 0x109   : > { %v991_v33 = vpop.f32.mrb[6].mxu1  ;;  %v539_v34 = vadd.f32 %v990_v29, %v454_v30  ;;  %v949_v35 = vadd.f32 %v948_v32, %v947_v31 }
 0x10a   : > { %v992_v36 = vpop.f32.mrb[7].mxu1 }
 0x10b   : > { %v993_v37 = vadd.f32 %v992_v36, %v991_v33  ;;  %v459_v38 = vadd.f32 %v949_v35, %v898_v8 }
 0x10d   : > { %v1070_v39 = vpop.f32.mrb[8].mxu1  ;;  %v544_v40 = vadd.f32 %v993_v37, %v459_v38 }
 0x10e   : > { %v698_v41 = vpop.f32.mrb[9].mxu1 }
 0x111   : > { %v1073_v42 = vpop.f32.mrb[10].mxu1 }
 0x112   : > { %v708_v43 = vpop.f32.mrb[11].mxu1 }
 0x11b   : > { %v1026_v44 = vpop.f32.mrb[8].mxu0 }
 0x11c   : > { %v1027_v45 = vpop.f32.mrb[9].mxu0 }
 0x11d   : > { %v1028_v46 = vadd.f32 %v1027_v45, %v1026_v44 }
 0x11f   : > { %v1029_v47 = vpop.f32.mrb[10].mxu0  ;;  %v614_v48 = vadd.f32 %v1028_v46, %v529_v18 }
 0x120   : > { %v1030_v49 = vpop.f32.mrb[11].mxu0 }
 0x121   : > { %v1031_v50 = vadd.f32 %v1030_v49, %v1029_v47  ;;  %v699_v51 = vadd.f32 %v698_v41, %v614_v48 }
 0x123   : > { %v619_v52 = vadd.f32 %v1031_v50, %v534_v26  ;;  %v717_v53 = vmax.f32 %v699_v51, 0.0  ;;  %v1032_v54 = vpop.f32.mrb[12].mxu0 }
 0x124   : > { %v1033_v55 = vpop.f32.mrb[13].mxu0 }
 0x125   : > { %v704_v56 = vadd.f32 %v1070_v39, %v619_v52  ;;  %v1034_v57 = vadd.f32 %v1033_v55, %v1032_v54  ;;  %1106 = vmatprep.mubr.f32.mxu1 %v717_v53 }
 0x127   : > { %v718_v58 = vmax.f32 %v704_v56, 0.0  ;;  %v1035_v59 = vpop.f32.mrb[14].mxu0  ;;  %v624_v60 = vadd.f32 %v1034_v57, %v539_v34 }
 0x128   : > { %v1036_v61 = vpop.f32.mrb[15].mxu0 }
 0x129   : > { %v1037_v62 = vadd.f32 %v1036_v61, %v1035_v59  ;;  %v709_v63 = vadd.f32 %v708_v43, %v624_v60  ;;  %1107 = vmatmul.mubr.f32.vlgmr.msra.gmra.mrb[12].mxu1 %v718_v58 }
 0x12b   : > { %v629_v0 = vadd.f32 %v1037_v62, %v544_v40  ;;  %v719_v1 = vmax.f32 %v709_v63, 0.0 }
 0x12d   : > { %1109 = vmatprep.mubr.f32.mxu1 %v719_v1  ;;  %v714_v2 = vadd.f32 %v1073_v42, %v629_v0 }
 0x12f   : > { %v720_v3 = vmax.f32 %v714_v2, 0.0 }
 0x131   : > { %1110 = vmatmul.mubr.f32.gmra.mrb[14].mxu1 %v720_v3 }
 0x1fc   : > { %v1108_v5 = vpop.f32.mrb[12].mxu1 }
 0x1fd   : > { %v810_v6 = vpop.f32.mrb[13].mxu1  ;;  %v816_v8 = vadd.f32 %v1108_v5, %v903_v4 }
 0x1fe   : > { %v811_v7 = vadd.f32 %v903_v4, %v810_v6 }
 0x1ff   : > { %830 = vst [vmem:[%s229_s9 + $0x8] sm:$0xff] %v816_v8 }
 0x200   : > { %829 = vst [vmem:[%s229_s9] sm:$0xff] %v811_v7 }
 0x204   : > { %v1111_v9 = vpop.f32.mrb[14].mxu1 }
 0x205   : > { %v820_v10 = vpop.f32.mrb[15].mxu1  ;;  %v826_v12 = vadd.f32 %v1111_v9, %v903_v4 }
 0x206   : > { %v821_v11 = vadd.f32 %v903_v4, %v820_v10 }
 0x207   : > { %832 = vst [vmem:[%s229_s9 + $0x18] sm:$0xff] %v826_v12 }
 0x208   : > { %831 = vst [vmem:[%s229_s9 + $0x10] sm:$0xff] %v821_v11 }
 0x209 PF: > { %s15_s18 = sadd.s32 1, %s1259_s18  }
 0x20a   : > { %p12_p4 = scmp.ge.s32.totalorder %s15_s18, 4  }
 0x20c   :  { %14 = sbr.rel (!%p12_p4) target bundleno = 1 (0x1), region = 70 }

</bundles_post_ra>
